<compile_context>
chip_gen: v6e
topology: v6e:2x2x1
jax: 0.10.0
libtpu: 0.0.40
codegen_flags: <defaults>
</compile_context>

<pallas_src>
import functools
import math

import jax
import jax.numpy as jnp
import numpy as np
from jax import lax
from jax.experimental import pallas as pl
from jax.experimental.pallas import tpu as pltpu

_EPS = 1e-5
_NEG_LARGE = -1e30                    # finite causal-mask sentinel (KV-tile safe)


@functools.lru_cache(maxsize=None)
def _tpu_config():
    """Per-generation tile sizes and scoped VMEM budget."""
    try:
        cap = int(pltpu.get_tpu_info().vmem_capacity_bytes)
    except Exception:
        cap = None
    if cap is not None and cap >= 100 * 1024 * 1024:
        # v5e / v6e: 128 MiB physical VMEM -- large tiles, generous budget.
        return {"vmem_limit": 96 * 1024 * 1024, "tq_proj": 512, "tn_proj": 512,
                "tq_ffn": 512, "tf_ffn": 512, "tq_attn": 256}
    if cap is not None:
        # v7x-class: 64 MiB per TensorCore -- keep double-buffering alive.
        return {"vmem_limit": 40 * 1024 * 1024, "tq_proj": 512, "tn_proj": 256,
                "tq_ffn": 256, "tf_ffn": 256, "tq_attn": 256}
    # Unknown hardware: conservative budget that fits every generation.
    return {"vmem_limit": 32 * 1024 * 1024, "tq_proj": 512, "tn_proj": 256,
            "tq_ffn": 256, "tf_ffn": 256, "tq_attn": 256}


def _pick_tile(dim, target, granule=128):
    """Largest tile <= target that divides dim and is a multiple of `granule`;
    falls back to the full dim for small/odd (demo) shapes."""
    if dim <= target:
        return dim
    t = (target // granule) * granule
    while t >= granule:
        if dim % t == 0:
            return t
        t -= granule
    return dim


# ---------------------------------------------------------------------------
# Kernel 1: fused (optional RMSNorm) + x @ W.T (+ optional residual).
# grid = (B, seq tiles, out-feature tiles); j (out-feature) is the innermost
# "arbitrary" axis so the normalized row is computed ONCE per (b, i) at j==0
# into a bf16 VMEM scratch and reused for all weight tiles.
# ---------------------------------------------------------------------------
def _proj_kernel(*refs, do_norm, add_residual, eps):
    it = iter(refs)
    x_ref = next(it)
    nw_ref = next(it) if do_norm else None
    w_ref = next(it)
    res_ref = next(it) if add_residual else None
    o_ref = next(it)
    hn_sc = next(it) if do_norm else None

    if do_norm:
        @pl.when(pl.program_id(2) == 0)
        def _():
            xf = x_ref[0].astype(jnp.float32)
            var = jnp.mean(xf * xf, axis=-1, keepdims=True)
            hn_sc[...] = (xf * lax.rsqrt(var + eps)
                          * nw_ref[0].astype(jnp.float32)).astype(jnp.bfloat16)
        xb = hn_sc[...]
    else:
        # x block is resident across j (index_map ignores j); cast is a no-op
        # when the input is already bf16.
        xb = x_ref[0].astype(jnp.bfloat16)

    acc = jnp.dot(xb, w_ref[...], preferred_element_type=jnp.float32)
    if add_residual:
        acc = acc + res_ref[0].astype(jnp.float32)
    o_ref[0] = acc.astype(o_ref.dtype)


def _norm_proj(x, norm_w, w_t, *, do_norm, residual=None,
               out_dtype=jnp.bfloat16):
    cfg = _tpu_config()
    B, S, D = x.shape
    N = w_t.shape[1]
    tq = _pick_tile(S, cfg["tq_proj"], granule=8)
    tn = _pick_tile(N, cfg["tn_proj"], granule=128)
    grid = (B, S // tq, N // tn)

    in_specs = [pl.BlockSpec((1, tq, D), lambda b, i, j: (b, i, 0))]
    args = [x]
    if do_norm:
        in_specs.append(pl.BlockSpec((1, D), lambda b, i, j: (0, 0)))
        args.append(norm_w)
    in_specs.append(pl.BlockSpec((D, tn), lambda b, i, j: (0, j)))
    args.append(w_t)
    if residual is not None:
        in_specs.append(pl.BlockSpec((1, tq, tn), lambda b, i, j: (b, i, j)))
        args.append(residual)

    scratch = [pltpu.VMEM((tq, D), jnp.bfloat16)] if do_norm else []

    kernel = functools.partial(_proj_kernel, do_norm=do_norm,
                               add_residual=residual is not None, eps=_EPS)
    return pl.pallas_call(
        kernel,
        out_shape=jax.ShapeDtypeStruct((B, S, N), out_dtype),
        grid=grid,
        in_specs=in_specs,
        out_specs=pl.BlockSpec((1, tq, tn), lambda b, i, j: (b, i, j)),
        scratch_shapes=scratch,
        compiler_params=pltpu.CompilerParams(
            dimension_semantics=("parallel", "parallel", "arbitrary"),
            vmem_limit_bytes=cfg["vmem_limit"]),
    )(*args)


# ---------------------------------------------------------------------------
# Kernel 2: flash attention, online softmax over KV tiles.
# RoPE and the 1/sqrt(hd) scale are already folded into Q/K outside.
# grid = (B, H, q tiles, kv tiles); kv innermost & "arbitrary"; kv index_map
# clamped to the diagonal so skipped (above-diagonal) tiles issue no DMA.
# ---------------------------------------------------------------------------
def _flash_attn_kernel(q_ref, k_ref, v_ref, o_ref, m_sc, l_sc, acc_sc,
                       *, tq, tkv):
    qi = pl.program_id(2)
    ki = pl.program_id(3)
    n_kv = pl.num_programs(3)

    @pl.when(ki == 0)
    def _():
        m_sc[...] = jnp.full(m_sc.shape, _NEG_LARGE, jnp.float32)
        l_sc[...] = jnp.zeros(l_sc.shape, jnp.float32)
        acc_sc[...] = jnp.zeros(acc_sc.shape, jnp.float32)

    def _online_update(masked):
        s = lax.dot_general(q_ref[0, 0], k_ref[0, 0],
                            (((1,), (1,)), ((), ())),
                            preferred_element_type=jnp.float32)
        if masked:
            row = qi * tq + lax.broadcasted_iota(jnp.int32, (tq, tkv), 0)
            col = ki * tkv + lax.broadcasted_iota(jnp.int32, (tq, tkv), 1)
            s = jnp.where(col <= row, s, _NEG_LARGE)
        m_prev = m_sc[...]
        m_new = jnp.maximum(m_prev, jnp.max(s, axis=-1, keepdims=True))
        alpha = jnp.exp(m_prev - m_new)
        p = jnp.exp(s - m_new)
        l_sc[...] = alpha * l_sc[...] + jnp.sum(p, axis=-1, keepdims=True)
        acc_sc[...] = alpha * acc_sc[...] + jnp.dot(
            p.astype(jnp.bfloat16), v_ref[0, 0],
            preferred_element_type=jnp.float32)
        m_sc[...] = m_new

    # Strictly-below-diagonal tile: no mask work at all.
    @pl.when(ki < qi)
    def _():
        _online_update(masked=False)

    # Diagonal tile: causal mask needed (tq == tkv).
    @pl.when(ki == qi)
    def _():
        _online_update(masked=True)

    # Above-diagonal tiles (ki > qi) are skipped entirely.

    @pl.when(ki == n_kv - 1)
    def _():
        inv_l = pl.reciprocal(l_sc[...], approx=True)
        o_ref[0, 0] = (acc_sc[...] * inv_l).astype(o_ref.dtype)


def _flash_attention(q, k, v, *, out_dtype=jnp.bfloat16):
    cfg = _tpu_config()
    B, H, S, hd = q.shape
    tq = _pick_tile(S, cfg["tq_attn"], granule=8)
    tkv = tq                                   # diagonal-only mask needs tq == tkv
    grid = (B, H, S // tq, S // tkv)

    q_spec = pl.BlockSpec((1, 1, tq, hd), lambda b, h, i, j: (b, h, i, 0))
    # Clamp to the diagonal: skipped above-diagonal steps re-use the resident
    # block instead of DMAing K/V tiles that are never read.
    kv_spec = pl.BlockSpec((1, 1, tkv, hd),
                           lambda b, h, i, j: (b, h, jnp.minimum(i, j), 0))
    # TODO(synk): pipeline_mode=pl.Buffered(3) on kv_spec could hide DMA
    #             latency further when per-tile compute is short.

    kernel = functools.partial(_flash_attn_kernel, tq=tq, tkv=tkv)
    return pl.pallas_call(
        kernel,
        out_shape=jax.ShapeDtypeStruct((B, H, S, hd), out_dtype),
        grid=grid,
        in_specs=[q_spec, kv_spec, kv_spec],
        out_specs=pl.BlockSpec((1, 1, tq, hd), lambda b, h, i, j: (b, h, i, 0)),
        scratch_shapes=[pltpu.VMEM((tq, 1), jnp.float32),     # running max
                        pltpu.VMEM((tq, 1), jnp.float32),     # running sum
                        pltpu.VMEM((tq, hd), jnp.float32)],   # accumulator
        compiler_params=pltpu.CompilerParams(
            dimension_semantics=("parallel", "parallel", "parallel",
                                 "arbitrary"),
            vmem_limit_bytes=cfg["vmem_limit"]),
    )(q, k, v)


# ---------------------------------------------------------------------------
# Kernel 3: fused RMSNorm + SwiGLU FFN + residual; F is the grid reduction
# axis so the (S, F) intermediate never leaves VMEM.
# ---------------------------------------------------------------------------
def _ffn_kernel(h_ref, nw_ref, w1_ref, w3_ref, w2_ref, o_ref,
                hn_sc, acc_sc, *, eps):
    f = pl.program_id(2)

    @pl.when(f == 0)
    def _():
        h = h_ref[0].astype(jnp.float32)
        var = jnp.mean(h * h, axis=-1, keepdims=True)
        hn = h * lax.rsqrt(var + eps) * nw_ref[0].astype(jnp.float32)
        hn_sc[...] = hn.astype(jnp.bfloat16)
        acc_sc[...] = jnp.zeros(acc_sc.shape, jnp.float32)

    hn = hn_sc[...]
    g = jnp.dot(hn, w1_ref[...], preferred_element_type=jnp.float32)
    u = jnp.dot(hn, w3_ref[...], preferred_element_type=jnp.float32)
    a = (g * jax.nn.sigmoid(g)) * u                      # silu(g) * u
    acc_sc[...] += jnp.dot(a.astype(jnp.bfloat16), w2_ref[...],
                           preferred_element_type=jnp.float32)

    @pl.when(f == pl.num_programs(2) - 1)
    def _():
        o_ref[0] = (h_ref[0].astype(jnp.float32) + acc_sc[...]).astype(o_ref.dtype)


def _ffn(h1, ffn_norm_w, w1_t, w3_t, w2_t):
    cfg = _tpu_config()
    B, S, D = h1.shape
    F = w1_t.shape[1]
    tq = _pick_tile(S, cfg["tq_ffn"], granule=8)
    tf = _pick_tile(F, cfg["tf_ffn"], granule=128)
    grid = (B, S // tq, F // tf)

    kernel = functools.partial(_ffn_kernel, eps=_EPS)
    return pl.pallas_call(
        kernel,
        out_shape=jax.ShapeDtypeStruct((B, S, D), h1.dtype),
        grid=grid,
        in_specs=[
            pl.BlockSpec((1, tq, D), lambda b, i, f: (b, i, 0)),
            pl.BlockSpec((1, D), lambda b, i, f: (0, 0)),
            pl.BlockSpec((D, tf), lambda b, i, f: (0, f)),
            pl.BlockSpec((D, tf), lambda b, i, f: (0, f)),
            pl.BlockSpec((tf, D), lambda b, i, f: (f, 0)),
        ],
        out_specs=pl.BlockSpec((1, tq, D), lambda b, i, f: (b, i, 0)),
        scratch_shapes=[pltpu.VMEM((tq, D), jnp.bfloat16),    # normalized h
                        pltpu.VMEM((tq, D), jnp.float32)],    # down-proj acc
        compiler_params=pltpu.CompilerParams(
            dimension_semantics=("parallel", "parallel", "arbitrary"),
            vmem_limit_bytes=cfg["vmem_limit"]),
    )(h1, ffn_norm_w, w1_t, w3_t, w2_t)


# ---------------------------------------------------------------------------
# RoPE (hoisted out of the attention inner loop; fused by XLA with the
# head-split transpose).  The 1/sqrt(hd) scale is folded into Q here.
# ---------------------------------------------------------------------------
def _apply_rope(t, cos, sin, scale=None):
    hd = t.shape[-1]
    half = hd // 2
    tf = t.astype(jnp.float32)
    rot = jnp.concatenate([-tf[..., half:], tf[..., :half]], axis=-1)
    out = tf * cos + rot * sin
    if scale is not None:
        out = out * scale
    return out.astype(jnp.bfloat16)


# ---------------------------------------------------------------------------
# One transformer block = 3 pallas_calls.
# ---------------------------------------------------------------------------
def llama_block_pallas(x, cos, sin, w, *, n_heads):
    B, S, D = x.shape
    hd = cos.shape[-1]

    # fused RMSNorm + QKV projection (single bf16 matmul against W_qkv.T)
    qkv = _norm_proj(x, w["attn_norm"], w["wqkv_t"], do_norm=True)
    q, k, v = qkv[..., :D], qkv[..., D:2 * D], qkv[..., 2 * D:]

    def split_heads(t):
        return t.reshape(B, S, n_heads, hd).transpose(0, 2, 1, 3)

    scale = 1.0 / math.sqrt(hd)
    qh = _apply_rope(split_heads(q), cos, sin, scale=scale)
    kh = _apply_rope(split_heads(k), cos, sin)
    vh = split_heads(v)                                    # already bf16

    attn_h = _flash_attention(qh, kh, vh)
    attn = attn_h.transpose(0, 2, 1, 3).reshape(B, S, D)

    # output projection + residual (residual stream kept in x.dtype / f32)
    h1 = _norm_proj(attn, None, w["wo_t"], do_norm=False, residual=x,
                    out_dtype=x.dtype)

    # fused RMSNorm + SwiGLU FFN + residual
    return _ffn(h1, w["ffn_norm"], w["w1_t"], w["w3_t"], w["w2_t"])


# ---------------------------------------------------------------------------
# One-time weight preparation (outside the scan): concat QKV, transpose to
# (in, out), cast matmul weights to bf16.
# ---------------------------------------------------------------------------
def _prepare_weights(stacked, dtype=jnp.bfloat16):
    wqkv = jnp.concatenate([stacked["attention.wq.weight"],
                            stacked["attention.wk.weight"],
                            stacked["attention.wv.weight"]], axis=1)   # (L,3D,D)
    return {
        "wqkv_t": jnp.swapaxes(wqkv, 1, 2).astype(dtype),                       # (L,D,3D)
        "wo_t": jnp.swapaxes(stacked["attention.wo.weight"], 1, 2).astype(dtype),
        "w1_t": jnp.swapaxes(stacked["feed_forward.w1.weight"], 1, 2).astype(dtype),
        "w3_t": jnp.swapaxes(stacked["feed_forward.w3.weight"], 1, 2).astype(dtype),
        "w2_t": jnp.swapaxes(stacked["feed_forward.w2.weight"], 1, 2).astype(dtype),
        "attn_norm": stacked["attention_norm.weight"][:, None, :],              # (L,1,D)
        "ffn_norm": stacked["ffn_norm.weight"][:, None, :],
    }


# ---------------------------------------------------------------------------
# ScanLayer forward (Pallas path): scan over stacked weights with inner unroll.
# ---------------------------------------------------------------------------
def scan_layer_forward(x, cos, sin, stacked_weights, *, num_layers,
                       unroll_layers, n_heads):
    prep = _prepare_weights(stacked_weights)
    reshaped = {k: v.reshape(num_layers // unroll_layers, unroll_layers,
                             *v.shape[1:]) for k, v in prep.items()}

    def eval_one_layer(h, weight):
        for i in range(unroll_layers):
            wi = {k: v[i] for k, v in weight.items()}
            # TODO(synk): skipped all_gather(w, axis=_fsdp_axis(k),
            #             axis_name='fsdp') -- single-device weights are full.
            h = llama_block_pallas(h, cos, sin, wi, n_heads=n_heads)
        return h, jnp.ones(1)

    eval_one_layer = jax.checkpoint(eval_one_layer)
    h, _ = jax.lax.scan(eval_one_layer, x, reshaped)
    return h


# ---------------------------------------------------------------------------
# Pure-JAX f32 reference (faithful to the torch module) for correctness check.
# ---------------------------------------------------------------------------
def llama_block_ref(x, cos, sin, w, *, n_heads):
    eps = _EPS
    D = x.shape[-1]
    head_dim = cos.shape[-1]

    def rmsnorm(v, g):
        return v * lax.rsqrt(jnp.mean(v * v, -1, keepdims=True) + eps) * g

    def rope(t):
        half = head_dim // 2
        rot = jnp.concatenate([-t[..., half:], t[..., :half]], axis=-1)
        return t * cos + rot * sin

    hn = rmsnorm(x, w["attention_norm.weight"])
    q = hn @ w["attention.wq.weight"].T
    k = hn @ w["attention.wk.weight"].T
    v = hn @ w["attention.wv.weight"].T
    B, S, _ = x.shape
    q = q.reshape(B, S, n_heads, head_dim).transpose(0, 2, 1, 3)
    k = k.reshape(B, S, n_heads, head_dim).transpose(0, 2, 1, 3)
    v = v.reshape(B, S, n_heads, head_dim).transpose(0, 2, 1, 3)
    q, k = rope(q), rope(k)
    s = jnp.einsum("bhqd,bhkd->bhqk", q, k) / math.sqrt(head_dim)
    causal = jnp.tril(jnp.ones((S, S), bool))
    s = jnp.where(causal, s, -jnp.inf)
    p = jax.nn.softmax(s, axis=-1)
    attn = jnp.einsum("bhqk,bhkd->bhqd", p, v).transpose(0, 2, 1, 3)
    attn = attn.reshape(B, S, D)
    h1 = x + attn @ w["attention.wo.weight"].T
    hn2 = rmsnorm(h1, w["ffn_norm.weight"])
    g = hn2 @ w["feed_forward.w1.weight"].T
    u = hn2 @ w["feed_forward.w3.weight"].T
    return h1 + (jax.nn.silu(g) * u) @ w["feed_forward.w2.weight"].T


def scan_layer_forward_ref(x, cos, sin, stacked_weights, *, num_layers,
                           unroll_layers, n_heads):
    reshaped = {k: v.reshape(num_layers // unroll_layers, unroll_layers,
                             *v.shape[1:]) for k, v in stacked_weights.items()}

    def eval_one_layer(h, weight):
        for i in range(unroll_layers):
            wi = {k: v[i] for k, v in weight.items()}
            h = llama_block_ref(h, cos, sin, wi, n_heads=n_heads)
        return h, jnp.ones(1)

    h, _ = jax.lax.scan(eval_one_layer, x, reshaped)
    return h


# ---------------------------------------------------------------------------
# Deterministic parameter construction (mimics ScanLayer.__init__ stacking).
# ---------------------------------------------------------------------------
def make_stacked_weights(key, *, dim, ffn_dim, num_layers):
    ks = jax.random.split(key, 7)
    one_block = {
        "attention.wq.weight": 0.02 * jax.random.normal(ks[0], (dim, dim), jnp.float32),
        "attention.wk.weight": 0.02 * jax.random.normal(ks[1], (dim, dim), jnp.float32),
        "attention.wv.weight": 0.02 * jax.random.normal(ks[2], (dim, dim), jnp.float32),
        "attention.wo.weight": 0.02 * jax.random.normal(ks[3], (dim, dim), jnp.float32),
        "feed_forward.w1.weight": 0.02 * jax.random.normal(ks[4], (ffn_dim, dim), jnp.float32),
        "feed_forward.w2.weight": 0.02 * jax.random.normal(ks[5], (dim, ffn_dim), jnp.float32),
        "feed_forward.w3.weight": 0.02 * jax.random.normal(ks[6], (ffn_dim, dim), jnp.float32),
        "attention_norm.weight": jnp.ones((dim,), jnp.float32),
        "ffn_norm.weight": jnp.ones((dim,), jnp.float32),
    }
    # torch.stack([v]*num_layers): identical copy per layer.
    return {k: jnp.stack([v] * num_layers) for k, v in one_block.items()}


def make_rope(seq_len, head_dim, theta=10000.0):
    freqs = 1.0 / (theta ** (jnp.arange(0, head_dim, 2, dtype=jnp.float32) / head_dim))
    t = jnp.arange(seq_len, dtype=jnp.float32)
    ang = jnp.outer(t, freqs)                       # (S, head_dim//2)
    ang = jnp.concatenate([ang, ang], axis=-1)      # (S, head_dim)
    return jnp.cos(ang), jnp.sin(ang)


if __name__ == "__main__":
    B, S, D = 2, 8, 32
    n_heads, head_dim = 4, 8
    ffn_dim = 64
    num_layers, unroll_layers = 4, 2

    key = jax.random.PRNGKey(0)
    kx, kw = jax.random.split(key)
    x = jax.random.normal(kx, (B, S, D), jnp.float32)
    cos, sin = make_rope(S, head_dim)
    weights = make_stacked_weights(kw, dim=D, ffn_dim=ffn_dim,
                                   num_layers=num_layers)

    fwd = jax.jit(functools.partial(
        scan_layer_forward, num_layers=num_layers,
        unroll_layers=unroll_layers, n_heads=n_heads))
    out = fwd(x, cos, sin, weights)
    jax.block_until_ready(out)

    ref = scan_layer_forward_ref(x, cos, sin, weights, num_layers=num_layers,
                                 unroll_layers=unroll_layers, n_heads=n_heads)
    # bf16 MXU inputs + approximate softmax reciprocal vs. f32 reference.
    np.testing.assert_allclose(np.asarray(out), np.asarray(ref),
                               rtol=2e-2, atol=2e-2)
    print("KERNEL_OK")
</pallas_src>

<mosaic_0001>
module attributes {stable_mosaic.version = 11 : i64} {
  func.func @_proj_kernel(%arg0: i32, %arg1: i32, %arg2: i32, %arg3: memref<1x8x32xf32, #tpu.memory_space<vmem>>, %arg4: memref<1x32xf32, #tpu.memory_space<vmem>>, %arg5: memref<32x96xbf16, #tpu.memory_space<vmem>>, %arg6: memref<1x8x96xbf16, #tpu.memory_space<vmem>>, %arg7: memref<8x32xbf16, #tpu.memory_space<vmem>>) attributes {dimension_semantics = [#tpu.dimension_semantics<parallel>, #tpu.dimension_semantics<parallel>, #tpu.dimension_semantics<arbitrary>], iteration_bounds = array<i64: 2, 1, 1>, scalar_prefetch = 0 : i64, scratch_operands = 1 : i64, tpu.core_type = #tpu.core_type<tc>, window_params = [{transform_indices = @transform_0, window_bounds = array<i64: 1, 8, 32>}, {pipeline_mode = #tpu.pipeline_mode<synchronous>, transform_indices = @transform_1, window_bounds = array<i64: 1, 32>}, {transform_indices = @transform_2, window_bounds = array<i64: 32, 96>}, {transform_indices = @transform_3, window_bounds = array<i64: 1, 8, 96>}]} {
    %c0_i32 = arith.constant 0 : i32
    %0 = arith.cmpi eq, %arg2, %c0_i32 : i32
    %1 = arith.extui %0 : i1 to i32
    %c0_i32_0 = arith.constant 0 : i32
    %2 = arith.cmpi ne, %1, %c0_i32_0 : i32
    scf.if %2 {
      %c0_7 = arith.constant 0 : index
      %c0_8 = arith.constant 0 : index
      %c0_9 = arith.constant 0 : index
      %10 = vector.load %arg3[%c0_7, %c0_8, %c0_9] : memref<1x8x32xf32, #tpu.memory_space<vmem>>, vector<1x8x32xf32>
      %11 = vector.shape_cast %10 : vector<1x8x32xf32> to vector<8x32xf32>
      %12 = arith.mulf %11, %11 : vector<8x32xf32>
      %cst_10 = arith.constant dense<0.000000e+00> : vector<8xf32>
      %13 = vector.multi_reduction <add>, %12, %cst_10 [1] : vector<8x32xf32> to vector<8xf32>
      %14 = vector.shape_cast %13 : vector<8xf32> to vector<8x1xf32>
      %cst_11 = arith.constant 3.200000e+01 : f32
      %15 = vector.broadcast %cst_11 : f32 to vector<8x1xf32>
      %16 = arith.divf %14, %15 : vector<8x1xf32>
      %cst_12 = arith.constant 9.99999974E-6 : f32
      %17 = vector.broadcast %cst_12 : f32 to vector<8x1xf32>
      %18 = arith.addf %16, %17 : vector<8x1xf32>
      %19 = math.rsqrt %18 : vector<8x1xf32>
      %20 = vector.broadcast %19 : vector<8x1xf32> to vector<8x32xf32>
      %21 = arith.mulf %11, %20 : vector<8x32xf32>
      %c0_13 = arith.constant 0 : index
      %c0_14 = arith.constant 0 : index
      %22 = vector.load %arg4[%c0_13, %c0_14] : memref<1x32xf32, #tpu.memory_space<vmem>>, vector<1x32xf32>
      %23 = vector.shape_cast %22 : vector<1x32xf32> to vector<32xf32>
      %24 = vector.shape_cast %23 : vector<32xf32> to vector<1x32xf32>
      %25 = vector.broadcast %24 : vector<1x32xf32> to vector<8x32xf32>
      %26 = arith.mulf %21, %25 : vector<8x32xf32>
      %27 = arith.truncf %26 : vector<8x32xf32> to vector<8x32xbf16>
      %c0_15 = arith.constant 0 : index
      %c0_16 = arith.constant 0 : index
      %28 = vector.load %arg7[%c0_15, %c0_16] : memref<8x32xbf16, #tpu.memory_space<vmem>>, vector<8x32xbf16>
      tpu.vector_store %arg7[%c0_15, %c0_16], %27 {strides = array<i32>} : memref<8x32xbf16, #tpu.memory_space<vmem>>, vector<8x32xbf16>,
    } else {
    }
    %c0 = arith.constant 0 : index
    %c0_1 = arith.constant 0 : index
    %3 = vector.load %arg7[%c0, %c0_1] : memref<8x32xbf16, #tpu.memory_space<vmem>>, vector<8x32xbf16>
    %c0_2 = arith.constant 0 : index
    %c0_3 = arith.constant 0 : index
    %4 = vector.load %arg5[%c0_2, %c0_3] : memref<32x96xbf16, #tpu.memory_space<vmem>>, vector<32x96xbf16>
    %cst = arith.constant dense<0.000000e+00> : vector<8x96xf32>
    %5 = tpu.matmul %3, %4, %cst {dimension_numbers = #tpu.dot_dimension_numbers<[1], [0], [0], [1], [0, 0, 1, 1], [], []>} : vector<8x32xbf16>, vector<32x96xbf16>, vector<8x96xf32> -> vector<8x96xf32>
    %6 = arith.truncf %5 : vector<8x96xf32> to vector<8x96xbf16>
    %c0_4 = arith.constant 0 : index
    %c0_5 = arith.constant 0 : index
    %c0_6 = arith.constant 0 : index
    %7 = vector.load %arg6[%c0_4, %c0_5, %c0_6] : memref<1x8x96xbf16, #tpu.memory_space<vmem>>, vector<1x8x96xbf16>
    %8 = vector.shape_cast %7 : vector<1x8x96xbf16> to vector<8x96xbf16>
    %9 = vector.shape_cast %6 : vector<8x96xbf16> to vector<1x8x96xbf16>
    tpu.vector_store %arg6[%c0_4, %c0_5, %c0_6], %9 {strides = array<i32>} : memref<1x8x96xbf16, #tpu.memory_space<vmem>>, vector<1x8x96xbf16>,
    return
  }
  func.func @transform_0(%arg0: i32, %arg1: i32, %arg2: i32) -> (i32, i32, i32) {
    %c0_i32 = arith.constant 0 : i32
    %c0_i32_0 = arith.constant 0 : i32
    return %arg0, %arg1, %c0_i32 : i32, i32, i32
  }
  func.func @transform_1(%arg0: i32, %arg1: i32, %arg2: i32) -> (i32, i32) {
    %c0_i32 = arith.constant 0 : i32
    %c0_i32_0 = arith.constant 0 : i32
    %c0_i32_1 = arith.constant 0 : i32
    return %c0_i32, %c0_i32_0 : i32, i32
  }
  func.func @transform_2(%arg0: i32, %arg1: i32, %arg2: i32) -> (i32, i32) {
    %c0_i32 = arith.constant 0 : i32
    %c0_i32_0 = arith.constant 0 : i32
    return %c0_i32, %arg2 : i32, i32
  }
  func.func @transform_3(%arg0: i32, %arg1: i32, %arg2: i32) -> (i32, i32, i32) {
    %c0_i32 = arith.constant 0 : i32
    return %arg0, %arg1, %arg2 : i32, i32, i32
  }
}

module attributes {stable_mosaic.version = 11 : i64} {
  func.func @_flash_attn_kernel(%arg0: i32, %arg1: i32, %arg2: i32, %arg3: i32, %arg4: memref<1x1x8x8xbf16, #tpu.memory_space<vmem>>, %arg5: memref<1x1x8x8xbf16, #tpu.memory_space<vmem>>, %arg6: memref<1x1x8x8xbf16, #tpu.memory_space<vmem>>, %arg7: memref<1x1x8x8xbf16, #tpu.memory_space<vmem>>, %arg8: memref<8x1xf32, #tpu.memory_space<vmem>>, %arg9: memref<8x1xf32, #tpu.memory_space<vmem>>, %arg10: memref<8x8xf32, #tpu.memory_space<vmem>>) attributes {dimension_semantics = [#tpu.dimension_semantics<parallel>, #tpu.dimension_semantics<parallel>, #tpu.dimension_semantics<parallel>, #tpu.dimension_semantics<arbitrary>], iteration_bounds = array<i64: 2, 4, 1, 1>, scalar_prefetch = 0 : i64, scratch_operands = 3 : i64, tpu.core_type = #tpu.core_type<tc>, window_params = [{transform_indices = @transform_0, window_bounds = array<i64: 1, 1, 8, 8>}, {transform_indices = @transform_1, window_bounds = array<i64: 1, 1, 8, 8>}, {transform_indices = @transform_2, window_bounds = array<i64: 1, 1, 8, 8>}, {transform_indices = @transform_3, window_bounds = array<i64: 1, 1, 8, 8>}]} {
    %c0_i32 = arith.constant 0 : i32
    %0 = arith.cmpi eq, %arg3, %c0_i32 : i32
    %1 = arith.extui %0 : i1 to i32
    %c0_i32_0 = arith.constant 0 : i32
    %2 = arith.cmpi ne, %1, %c0_i32_0 : i32
    scf.if %2 {
      %cst = arith.constant -1.000000e+30 : f32
      %12 = vector.broadcast %cst : f32 to vector<8x1xf32>
      %c0 = arith.constant 0 : index
      %c0_5 = arith.constant 0 : index
      %13 = vector.load %arg8[%c0, %c0_5] : memref<8x1xf32, #tpu.memory_space<vmem>>, vector<8x1xf32>
      tpu.vector_store %arg8[%c0, %c0_5], %12 {strides = array<i32>} : memref<8x1xf32, #tpu.memory_space<vmem>>, vector<8x1xf32>,
      %cst_6 = arith.constant 0.000000e+00 : f32
      %14 = vector.broadcast %cst_6 : f32 to vector<8x1xf32>
      %c0_7 = arith.constant 0 : index
      %c0_8 = arith.constant 0 : index
      %15 = vector.load %arg9[%c0_7, %c0_8] : memref<8x1xf32, #tpu.memory_space<vmem>>, vector<8x1xf32>
      tpu.vector_store %arg9[%c0_7, %c0_8], %14 {strides = array<i32>} : memref<8x1xf32, #tpu.memory_space<vmem>>, vector<8x1xf32>,
      %cst_9 = arith.constant 0.000000e+00 : f32
      %16 = vector.broadcast %cst_9 : f32 to vector<8x8xf32>
      %c0_10 = arith.constant 0 : index
      %c0_11 = arith.constant 0 : index
      %17 = vector.load %arg10[%c0_10, %c0_11] : memref<8x8xf32, #tpu.memory_space<vmem>>, vector<8x8xf32>
      tpu.vector_store %arg10[%c0_10, %c0_11], %16 {strides = array<i32>} : memref<8x8xf32, #tpu.memory_space<vmem>>, vector<8x8xf32>,
    } else {
    }
    %3 = arith.cmpi slt, %arg3, %arg2 : i32
    %4 = arith.extui %3 : i1 to i32
    %c0_i32_1 = arith.constant 0 : i32
    %5 = arith.cmpi ne, %4, %c0_i32_1 : i32
    scf.if %5 {
      %c0 = arith.constant 0 : index
      %c0_5 = arith.constant 0 : index
      %c0_6 = arith.constant 0 : index
      %c0_7 = arith.constant 0 : index
      %12 = vector.load %arg4[%c0, %c0_5, %c0_6, %c0_7] : memref<1x1x8x8xbf16, #tpu.memory_space<vmem>>, vector<1x1x8x8xbf16>
      %13 = vector.shape_cast %12 : vector<1x1x8x8xbf16> to vector<8x8xbf16>
      %c0_8 = arith.constant 0 : index
      %c0_9 = arith.constant 0 : index
      %c0_10 = arith.constant 0 : index
      %c0_11 = arith.constant 0 : index
      %14 = vector.load %arg5[%c0_8, %c0_9, %c0_10, %c0_11] : memref<1x1x8x8xbf16, #tpu.memory_space<vmem>>, vector<1x1x8x8xbf16>
      %15 = vector.shape_cast %14 : vector<1x1x8x8xbf16> to vector<8x8xbf16>
      %cst = arith.constant dense<0.000000e+00> : vector<8x8xf32>
      %16 = tpu.matmul %13, %15, %cst {dimension_numbers = #tpu.dot_dimension_numbers<[1], [1], [0], [0], [0, 0, 1, 0], [], []>} : vector<8x8xbf16>, vector<8x8xbf16>, vector<8x8xf32> -> vector<8x8xf32>
      %c0_12 = arith.constant 0 : index
      %c0_13 = arith.constant 0 : index
      %17 = vector.load %arg8[%c0_12, %c0_13] : memref<8x1xf32, #tpu.memory_space<vmem>>, vector<8x1xf32>
      %cst_14 = arith.constant dense<0xFF800000> : vector<8xf32>
      %18 = vector.multi_reduction <maximumf>, %16, %cst_14 [1] : vector<8x8xf32> to vector<8xf32>
      %19 = vector.shape_cast %18 : vector<8xf32> to vector<8x1xf32>
      %20 = arith.maximumf %17, %19 : vector<8x1xf32>
      %21 = arith.subf %17, %20 : vector<8x1xf32>
      %22 = math.exp %21 : vector<8x1xf32>
      %23 = vector.broadcast %20 : vector<8x1xf32> to vector<8x8xf32>
      %24 = arith.subf %16, %23 : vector<8x8xf32>
      %25 = math.exp %24 : vector<8x8xf32>
      %c0_15 = arith.constant 0 : index
      %c0_16 = arith.constant 0 : index
      %26 = vector.load %arg9[%c0_15, %c0_16] : memref<8x1xf32, #tpu.memory_space<vmem>>, vector<8x1xf32>
      %27 = arith.mulf %22, %26 : vector<8x1xf32>
      %cst_17 = arith.constant dense<0.000000e+00> : vector<8xf32>
      %28 = vector.multi_reduction <add>, %25, %cst_17 [1] : vector<8x8xf32> to vector<8xf32>
      %29 = vector.shape_cast %28 : vector<8xf32> to vector<8x1xf32>
      %30 = arith.addf %27, %29 : vector<8x1xf32>
      %c0_18 = arith.constant 0 : index
      %c0_19 = arith.constant 0 : index
      %31 = vector.load %arg9[%c0_18, %c0_19] : memref<8x1xf32, #tpu.memory_space<vmem>>, vector<8x1xf32>
      tpu.vector_store %arg9[%c0_18, %c0_19], %30 {strides = array<i32>} : memref<8x1xf32, #tpu.memory_space<vmem>>, vector<8x1xf32>,
      %c0_20 = arith.constant 0 : index
      %c0_21 = arith.constant 0 : index
      %32 = vector.load %arg10[%c0_20, %c0_21] : memref<8x8xf32, #tpu.memory_space<vmem>>, vector<8x8xf32>
      %33 = vector.broadcast %22 : vector<8x1xf32> to vector<8x8xf32>
      %34 = arith.mulf %33, %32 : vector<8x8xf32>
      %35 = arith.truncf %25 : vector<8x8xf32> to vector<8x8xbf16>
      %c0_22 = arith.constant 0 : index
      %c0_23 = arith.constant 0 : index
      %c0_24 = arith.constant 0 : index
      %c0_25 = arith.constant 0 : index
      %36 = vector.load %arg6[%c0_22, %c0_23, %c0_24, %c0_25] : memref<1x1x8x8xbf16, #tpu.memory_space<vmem>>, vector<1x1x8x8xbf16>
      %37 = vector.shape_cast %36 : vector<1x1x8x8xbf16> to vector<8x8xbf16>
      %cst_26 = arith.constant dense<0.000000e+00> : vector<8x8xf32>
      %38 = tpu.matmul %35, %37, %cst_26 {dimension_numbers = #tpu.dot_dimension_numbers<[1], [0], [0], [1], [0, 0, 1, 1], [], []>} : vector<8x8xbf16>, vector<8x8xbf16>, vector<8x8xf32> -> vector<8x8xf32>
      %39 = arith.addf %34, %38 : vector<8x8xf32>
      %c0_27 = arith.constant 0 : index
      %c0_28 = arith.constant 0 : index
      %40 = vector.load %arg10[%c0_27, %c0_28] : memref<8x8xf32, #tpu.memory_space<vmem>>, vector<8x8xf32>
      tpu.vector_store %arg10[%c0_27, %c0_28], %39 {strides = array<i32>} : memref<8x8xf32, #tpu.memory_space<vmem>>, vector<8x8xf32>,
      %c0_29 = arith.constant 0 : index
      %c0_30 = arith.constant 0 : index
      %41 = vector.load %arg8[%c0_29, %c0_30] : memref<8x1xf32, #tpu.memory_space<vmem>>, vector<8x1xf32>
      tpu.vector_store %arg8[%c0_29, %c0_30], %20 {strides = array<i32>} : memref<8x1xf32, #tpu.memory_space<vmem>>, vector<8x1xf32>,
    } else {
    }
    %6 = arith.cmpi eq, %arg3, %arg2 : i32
    %7 = arith.extui %6 : i1 to i32
    %c0_i32_2 = arith.constant 0 : i32
    %8 = arith.cmpi ne, %7, %c0_i32_2 : i32
    scf.if %8 {
      %c0 = arith.constant 0 : index
      %c0_5 = arith.constant 0 : index
      %c0_6 = arith.constant 0 : index
      %c0_7 = arith.constant 0 : index
      %12 = vector.load %arg4[%c0, %c0_5, %c0_6, %c0_7] : memref<1x1x8x8xbf16, #tpu.memory_space<vmem>>, vector<1x1x8x8xbf16>
      %13 = vector.shape_cast %12 : vector<1x1x8x8xbf16> to vector<8x8xbf16>
      %c0_8 = arith.constant 0 : index
      %c0_9 = arith.constant 0 : index
      %c0_10 = arith.constant 0 : index
      %c0_11 = arith.constant 0 : index
      %14 = vector.load %arg5[%c0_8, %c0_9, %c0_10, %c0_11] : memref<1x1x8x8xbf16, #tpu.memory_space<vmem>>, vector<1x1x8x8xbf16>
      %15 = vector.shape_cast %14 : vector<1x1x8x8xbf16> to vector<8x8xbf16>
      %cst = arith.constant dense<0.000000e+00> : vector<8x8xf32>
      %16 = tpu.matmul %13, %15, %cst {dimension_numbers = #tpu.dot_dimension_numbers<[1], [1], [0], [0], [0, 0, 1, 0], [], []>} : vector<8x8xbf16>, vector<8x8xbf16>, vector<8x8xf32> -> vector<8x8xf32>
      %c8_i32 = arith.constant 8 : i32
      %17 = arith.muli %arg2, %c8_i32 : i32
      %18 = tpu.iota {dimensions = array<i32: 0>} : vector<8x8xi32>
      %19 = vector.broadcast %17 : i32 to vector<8x8xi32>
      %20 = arith.addi %19, %18 : vector<8x8xi32>
      %c8_i32_12 = arith.constant 8 : i32
      %21 = arith.muli %arg3, %c8_i32_12 : i32
      %22 = tpu.iota {dimensions = array<i32: 1>} : vector<8x8xi32>
      %23 = vector.broadcast %21 : i32 to vector<8x8xi32>
      %24 = arith.addi %23, %22 : vector<8x8xi32>
      %25 = arith.cmpi sle, %24, %20 : vector<8x8xi32>
      %cst_13 = arith.constant -1.000000e+30 : f32
      %26 = vector.broadcast %cst_13 : f32 to vector<8x8xf32>
      %27 = arith.select %25, %16, %26 : vector<8x8xi1>, vector<8x8xf32>
      %c0_14 = arith.constant 0 : index
      %c0_15 = arith.constant 0 : index
      %28 = vector.load %arg8[%c0_14, %c0_15] : memref<8x1xf32, #tpu.memory_space<vmem>>, vector<8x1xf32>
      %cst_16 = arith.constant dense<0xFF800000> : vector<8xf32>
      %29 = vector.multi_reduction <maximumf>, %27, %cst_16 [1] : vector<8x8xf32> to vector<8xf32>
      %30 = vector.shape_cast %29 : vector<8xf32> to vector<8x1xf32>
      %31 = arith.maximumf %28, %30 : vector<8x1xf32>
      %32 = arith.subf %28, %31 : vector<8x1xf32>
      %33 = math.exp %32 : vector<8x1xf32>
      %34 = vector.broadcast %31 : vector<8x1xf32> to vector<8x8xf32>
      %35 = arith.subf %27, %34 : vector<8x8xf32>
      %36 = math.exp %35 : vector<8x8xf32>
      %c0_17 = arith.constant 0 : index
      %c0_18 = arith.constant 0 : index
      %37 = vector.load %arg9[%c0_17, %c0_18] : memref<8x1xf32, #tpu.memory_space<vmem>>, vector<8x1xf32>
      %38 = arith.mulf %33, %37 : vector<8x1xf32>
      %cst_19 = arith.constant dense<0.000000e+00> : vector<8xf32>
      %39 = vector.multi_reduction <add>, %36, %cst_19 [1] : vector<8x8xf32> to vector<8xf32>
      %40 = vector.shape_cast %39 : vector<8xf32> to vector<8x1xf32>
      %41 = arith.addf %38, %40 : vector<8x1xf32>
      %c0_20 = arith.constant 0 : index
      %c0_21 = arith.constant 0 : index
      %42 = vector.load %arg9[%c0_20, %c0_21] : memref<8x1xf32, #tpu.memory_space<vmem>>, vector<8x1xf32>
      tpu.vector_store %arg9[%c0_20, %c0_21], %41 {strides = array<i32>} : memref<8x1xf32, #tpu.memory_space<vmem>>, vector<8x1xf32>,
      %c0_22 = arith.constant 0 : index
      %c0_23 = arith.constant 0 : index
      %43 = vector.load %arg10[%c0_22, %c0_23] : memref<8x8xf32, #tpu.memory_space<vmem>>, vector<8x8xf32>
      %44 = vector.broadcast %33 : vector<8x1xf32> to vector<8x8xf32>
      %45 = arith.mulf %44, %43 : vector<8x8xf32>
      %46 = arith.truncf %36 : vector<8x8xf32> to vector<8x8xbf16>
      %c0_24 = arith.constant 0 : index
      %c0_25 = arith.constant 0 : index
      %c0_26 = arith.constant 0 : index
      %c0_27 = arith.constant 0 : index
      %47 = vector.load %arg6[%c0_24, %c0_25, %c0_26, %c0_27] : memref<1x1x8x8xbf16, #tpu.memory_space<vmem>>, vector<1x1x8x8xbf16>
      %48 = vector.shape_cast %47 : vector<1x1x8x8xbf16> to vector<8x8xbf16>
      %cst_28 = arith.constant dense<0.000000e+00> : vector<8x8xf32>
      %49 = tpu.matmul %46, %48, %cst_28 {dimension_numbers = #tpu.dot_dimension_numbers<[1], [0], [0], [1], [0, 0, 1, 1], [], []>} : vector<8x8xbf16>, vector<8x8xbf16>, vector<8x8xf32> -> vector<8x8xf32>
      %50 = arith.addf %45, %49 : vector<8x8xf32>
      %c0_29 = arith.constant 0 : index
      %c0_30 = arith.constant 0 : index
      %51 = vector.load %arg10[%c0_29, %c0_30] : memref<8x8xf32, #tpu.memory_space<vmem>>, vector<8x8xf32>
      tpu.vector_store %arg10[%c0_29, %c0_30], %50 {strides = array<i32>} : memref<8x8xf32, #tpu.memory_space<vmem>>, vector<8x8xf32>,
      %c0_31 = arith.constant 0 : index
      %c0_32 = arith.constant 0 : index
      %52 = vector.load %arg8[%c0_31, %c0_32] : memref<8x1xf32, #tpu.memory_space<vmem>>, vector<8x1xf32>
      tpu.vector_store %arg8[%c0_31, %c0_32], %31 {strides = array<i32>} : memref<8x1xf32, #tpu.memory_space<vmem>>, vector<8x1xf32>,
    } else {
    }
    %c0_i32_3 = arith.constant 0 : i32
    %9 = arith.cmpi eq, %arg3, %c0_i32_3 : i32
    %10 = arith.extui %9 : i1 to i32
    %c0_i32_4 = arith.constant 0 : i32
    %11 = arith.cmpi ne, %10, %c0_i32_4 : i32
    scf.if %11 {
      %c0 = arith.constant 0 : index
      %c0_5 = arith.constant 0 : index
      %12 = vector.load %arg9[%c0, %c0_5] : memref<8x1xf32, #tpu.memory_space<vmem>>, vector<8x1xf32>
      %13 = tpu.reciprocal %12 {approx = true} : vector<8x1xf32> -> vector<8x1xf32>
      %c0_6 = arith.constant 0 : index
      %c0_7 = arith.constant 0 : index
      %14 = vector.load %arg10[%c0_6, %c0_7] : memref<8x8xf32, #tpu.memory_space<vmem>>, vector<8x8xf32>
      %15 = vector.broadcast %13 : vector<8x1xf32> to vector<8x8xf32>
      %16 = arith.mulf %14, %15 : vector<8x8xf32>
      %17 = arith.truncf %16 : vector<8x8xf32> to vector<8x8xbf16>
      %c0_8 = arith.constant 0 : index
      %c0_9 = arith.constant 0 : index
      %c0_10 = arith.constant 0 : index
      %c0_11 = arith.constant 0 : index
      %18 = vector.load %arg7[%c0_8, %c0_9, %c0_10, %c0_11] : memref<1x1x8x8xbf16, #tpu.memory_space<vmem>>, vector<1x1x8x8xbf16>
      %19 = vector.shape_cast %18 : vector<1x1x8x8xbf16> to vector<8x8xbf16>
      %20 = vector.shape_cast %17 : vector<8x8xbf16> to vector<1x1x8x8xbf16>
      tpu.vector_store %arg7[%c0_8, %c0_9, %c0_10, %c0_11], %20 {strides = array<i32>} : memref<1x1x8x8xbf16, #tpu.memory_space<vmem>>, vector<1x1x8x8xbf16>,
    } else {
    }
    return
  }
  func.func @transform_0(%arg0: i32, %arg1: i32, %arg2: i32, %arg3: i32) -> (i32, i32, i32, i32) {
    %c0_i32 = arith.constant 0 : i32
    %c0_i32_0 = arith.constant 0 : i32
    return %arg0, %arg1, %arg2, %c0_i32 : i32, i32, i32, i32
  }
  func.func @transform_1(%arg0: i32, %arg1: i32, %arg2: i32, %arg3: i32) -> (i32, i32, i32, i32) {
    %0 = arith.minsi %arg2, %arg3 : i32
    %c0_i32 = arith.constant 0 : i32
    %c0_i32_0 = arith.constant 0 : i32
    return %arg0, %arg1, %0, %c0_i32 : i32, i32, i32, i32
  }
  func.func @transform_2(%arg0: i32, %arg1: i32, %arg2: i32, %arg3: i32) -> (i32, i32, i32, i32) {
    %0 = arith.minsi %arg2, %arg3 : i32
    %c0_i32 = arith.constant 0 : i32
    %c0_i32_0 = arith.constant 0 : i32
    return %arg0, %arg1, %0, %c0_i32 : i32, i32, i32, i32
  }
  func.func @transform_3(%arg0: i32, %arg1: i32, %arg2: i32, %arg3: i32) -> (i32, i32, i32, i32) {
    %c0_i32 = arith.constant 0 : i32
    %c0_i32_0 = arith.constant 0 : i32
    return %arg0, %arg1, %arg2, %c0_i32 : i32, i32, i32, i32
  }
}

module attributes {stable_mosaic.version = 11 : i64} {
  func.func @_proj_kernel(%arg0: i32, %arg1: i32, %arg2: i32, %arg3: memref<1x8x32xbf16, #tpu.memory_space<vmem>>, %arg4: memref<32x32xbf16, #tpu.memory_space<vmem>>, %arg5: memref<1x8x32xf32, #tpu.memory_space<vmem>>, %arg6: memref<1x8x32xf32, #tpu.memory_space<vmem>>) attributes {dimension_semantics = [#tpu.dimension_semantics<parallel>, #tpu.dimension_semantics<parallel>, #tpu.dimension_semantics<arbitrary>], iteration_bounds = array<i64: 2, 1, 1>, scalar_prefetch = 0 : i64, scratch_operands = 0 : i64, tpu.core_type = #tpu.core_type<tc>, window_params = [{transform_indices = @transform_0, window_bounds = array<i64: 1, 8, 32>}, {transform_indices = @transform_1, window_bounds = array<i64: 32, 32>}, {transform_indices = @transform_2, window_bounds = array<i64: 1, 8, 32>}, {transform_indices = @transform_3, window_bounds = array<i64: 1, 8, 32>}]} {
    %c0 = arith.constant 0 : index
    %c0_0 = arith.constant 0 : index
    %c0_1 = arith.constant 0 : index
    %0 = vector.load %arg3[%c0, %c0_0, %c0_1] : memref<1x8x32xbf16, #tpu.memory_space<vmem>>, vector<1x8x32xbf16>
    %1 = vector.shape_cast %0 : vector<1x8x32xbf16> to vector<8x32xbf16>
    %c0_2 = arith.constant 0 : index
    %c0_3 = arith.constant 0 : index
    %2 = vector.load %arg4[%c0_2, %c0_3] : memref<32x32xbf16, #tpu.memory_space<vmem>>, vector<32x32xbf16>
    %cst = arith.constant dense<0.000000e+00> : vector<8x32xf32>
    %3 = tpu.matmul %1, %2, %cst {dimension_numbers = #tpu.dot_dimension_numbers<[1], [0], [0], [1], [0, 0, 1, 1], [], []>} : vector<8x32xbf16>, vector<32x32xbf16>, vector<8x32xf32> -> vector<8x32xf32>
    %c0_4 = arith.constant 0 : index
    %c0_5 = arith.constant 0 : index
    %c0_6 = arith.constant 0 : index
    %4 = vector.load %arg5[%c0_4, %c0_5, %c0_6] : memref<1x8x32xf32, #tpu.memory_space<vmem>>, vector<1x8x32xf32>
    %5 = vector.shape_cast %4 : vector<1x8x32xf32> to vector<8x32xf32>
    %6 = arith.addf %3, %5 : vector<8x32xf32>
    %c0_7 = arith.constant 0 : index
    %c0_8 = arith.constant 0 : index
    %c0_9 = arith.constant 0 : index
    %7 = vector.load %arg6[%c0_7, %c0_8, %c0_9] : memref<1x8x32xf32, #tpu.memory_space<vmem>>, vector<1x8x32xf32>
    %8 = vector.shape_cast %7 : vector<1x8x32xf32> to vector<8x32xf32>
    %9 = vector.shape_cast %6 : vector<8x32xf32> to vector<1x8x32xf32>
    tpu.vector_store %arg6[%c0_7, %c0_8, %c0_9], %9 {strides = array<i32>} : memref<1x8x32xf32, #tpu.memory_space<vmem>>, vector<1x8x32xf32>,
    return
  }
  func.func @transform_0(%arg0: i32, %arg1: i32, %arg2: i32) -> (i32, i32, i32) {
    %c0_i32 = arith.constant 0 : i32
    %c0_i32_0 = arith.constant 0 : i32
    return %arg0, %arg1, %c0_i32 : i32, i32, i32
  }
  func.func @transform_1(%arg0: i32, %arg1: i32, %arg2: i32) -> (i32, i32) {
    %c0_i32 = arith.constant 0 : i32
    %c0_i32_0 = arith.constant 0 : i32
    return %c0_i32, %arg2 : i32, i32
  }
  func.func @transform_2(%arg0: i32, %arg1: i32, %arg2: i32) -> (i32, i32, i32) {
    %c0_i32 = arith.constant 0 : i32
    return %arg0, %arg1, %arg2 : i32, i32, i32
  }
  func.func @transform_3(%arg0: i32, %arg1: i32, %arg2: i32) -> (i32, i32, i32) {
    %c0_i32 = arith.constant 0 : i32
    return %arg0, %arg1, %arg2 : i32, i32, i32
  }
}

module attributes {stable_mosaic.version = 11 : i64} {
  func.func @_ffn_kernel(%arg0: i32, %arg1: i32, %arg2: i32, %arg3: memref<1x8x32xf32, #tpu.memory_space<vmem>>, %arg4: memref<1x32xf32, #tpu.memory_space<vmem>>, %arg5: memref<32x64xbf16, #tpu.memory_space<vmem>>, %arg6: memref<32x64xbf16, #tpu.memory_space<vmem>>, %arg7: memref<64x32xbf16, #tpu.memory_space<vmem>>, %arg8: memref<1x8x32xf32, #tpu.memory_space<vmem>>, %arg9: memref<8x32xbf16, #tpu.memory_space<vmem>>, %arg10: memref<8x32xf32, #tpu.memory_space<vmem>>) attributes {dimension_semantics = [#tpu.dimension_semantics<parallel>, #tpu.dimension_semantics<parallel>, #tpu.dimension_semantics<arbitrary>], iteration_bounds = array<i64: 2, 1, 1>, scalar_prefetch = 0 : i64, scratch_operands = 2 : i64, tpu.core_type = #tpu.core_type<tc>, window_params = [{transform_indices = @transform_0, window_bounds = array<i64: 1, 8, 32>}, {pipeline_mode = #tpu.pipeline_mode<synchronous>, transform_indices = @transform_1, window_bounds = array<i64: 1, 32>}, {transform_indices = @transform_2, window_bounds = array<i64: 32, 64>}, {transform_indices = @transform_3, window_bounds = array<i64: 32, 64>}, {transform_indices = @transform_4, window_bounds = array<i64: 64, 32>}, {transform_indices = @transform_5, window_bounds = array<i64: 1, 8, 32>}]} {
    %c0_i32 = arith.constant 0 : i32
    %0 = arith.cmpi eq, %arg2, %c0_i32 : i32
    %1 = arith.extui %0 : i1 to i32
    %c0_i32_0 = arith.constant 0 : i32
    %2 = arith.cmpi ne, %1, %c0_i32_0 : i32
    scf.if %2 {
      %c0_17 = arith.constant 0 : index
      %c0_18 = arith.constant 0 : index
      %c0_19 = arith.constant 0 : index
      %24 = vector.load %arg3[%c0_17, %c0_18, %c0_19] : memref<1x8x32xf32, #tpu.memory_space<vmem>>, vector<1x8x32xf32>
      %25 = vector.shape_cast %24 : vector<1x8x32xf32> to vector<8x32xf32>
      %26 = arith.mulf %25, %25 : vector<8x32xf32>
      %cst_20 = arith.constant dense<0.000000e+00> : vector<8xf32>
      %27 = vector.multi_reduction <add>, %26, %cst_20 [1] : vector<8x32xf32> to vector<8xf32>
      %28 = vector.shape_cast %27 : vector<8xf32> to vector<8x1xf32>
      %cst_21 = arith.constant 3.200000e+01 : f32
      %29 = vector.broadcast %cst_21 : f32 to vector<8x1xf32>
      %30 = arith.divf %28, %29 : vector<8x1xf32>
      %cst_22 = arith.constant 9.99999974E-6 : f32
      %31 = vector.broadcast %cst_22 : f32 to vector<8x1xf32>
      %32 = arith.addf %30, %31 : vector<8x1xf32>
      %33 = math.rsqrt %32 : vector<8x1xf32>
      %34 = vector.broadcast %33 : vector<8x1xf32> to vector<8x32xf32>
      %35 = arith.mulf %25, %34 : vector<8x32xf32>
      %c0_23 = arith.constant 0 : index
      %c0_24 = arith.constant 0 : index
      %36 = vector.load %arg4[%c0_23, %c0_24] : memref<1x32xf32, #tpu.memory_space<vmem>>, vector<1x32xf32>
      %37 = vector.shape_cast %36 : vector<1x32xf32> to vector<32xf32>
      %38 = vector.shape_cast %37 : vector<32xf32> to vector<1x32xf32>
      %39 = vector.broadcast %38 : vector<1x32xf32> to vector<8x32xf32>
      %40 = arith.mulf %35, %39 : vector<8x32xf32>
      %41 = arith.truncf %40 : vector<8x32xf32> to vector<8x32xbf16>
      %c0_25 = arith.constant 0 : index
      %c0_26 = arith.constant 0 : index
      %42 = vector.load %arg9[%c0_25, %c0_26] : memref<8x32xbf16, #tpu.memory_space<vmem>>, vector<8x32xbf16>
      tpu.vector_store %arg9[%c0_25, %c0_26], %41 {strides = array<i32>} : memref<8x32xbf16, #tpu.memory_space<vmem>>, vector<8x32xbf16>,
      %cst_27 = arith.constant 0.000000e+00 : f32
      %43 = vector.broadcast %cst_27 : f32 to vector<8x32xf32>
      %c0_28 = arith.constant 0 : index
      %c0_29 = arith.constant 0 : index
      %44 = vector.load %arg10[%c0_28, %c0_29] : memref<8x32xf32, #tpu.memory_space<vmem>>, vector<8x32xf32>
      tpu.vector_store %arg10[%c0_28, %c0_29], %43 {strides = array<i32>} : memref<8x32xf32, #tpu.memory_space<vmem>>, vector<8x32xf32>,
    } else {
    }
    %c0 = arith.constant 0 : index
    %c0_1 = arith.constant 0 : index
    %3 = vector.load %arg9[%c0, %c0_1] : memref<8x32xbf16, #tpu.memory_space<vmem>>, vector<8x32xbf16>
    %c0_2 = arith.constant 0 : index
    %c0_3 = arith.constant 0 : index
    %4 = vector.load %arg5[%c0_2, %c0_3] : memref<32x64xbf16, #tpu.memory_space<vmem>>, vector<32x64xbf16>
    %cst = arith.constant dense<0.000000e+00> : vector<8x64xf32>
    %5 = tpu.matmul %3, %4, %cst {dimension_numbers = #tpu.dot_dimension_numbers<[1], [0], [0], [1], [0, 0, 1, 1], [], []>} : vector<8x32xbf16>, vector<32x64xbf16>, vector<8x64xf32> -> vector<8x64xf32>
    %c0_4 = arith.constant 0 : index
    %c0_5 = arith.constant 0 : index
    %6 = vector.load %arg6[%c0_4, %c0_5] : memref<32x64xbf16, #tpu.memory_space<vmem>>, vector<32x64xbf16>
    %cst_6 = arith.constant dense<0.000000e+00> : vector<8x64xf32>
    %7 = tpu.matmul %3, %6, %cst_6 {dimension_numbers = #tpu.dot_dimension_numbers<[1], [0], [0], [1], [0, 0, 1, 1], [], []>} : vector<8x32xbf16>, vector<32x64xbf16>, vector<8x64xf32> -> vector<8x64xf32>
    %8 = arith.negf %5 : vector<8x64xf32>
    %9 = math.exp %8 : vector<8x64xf32>
    %cst_7 = arith.constant 1.000000e+00 : f32
    %10 = vector.broadcast %cst_7 : f32 to vector<8x64xf32>
    %11 = arith.addf %10, %9 : vector<8x64xf32>
    %12 = arith.divf %10, %11 : vector<8x64xf32>
    %13 = arith.mulf %5, %12 : vector<8x64xf32>
    %14 = arith.mulf %13, %7 : vector<8x64xf32>
    %c0_8 = arith.constant 0 : index
    %c0_9 = arith.constant 0 : index
    %15 = vector.load %arg10[%c0_8, %c0_9] : memref<8x32xf32, #tpu.memory_space<vmem>>, vector<8x32xf32>
    %16 = arith.truncf %14 : vector<8x64xf32> to vector<8x64xbf16>
    %c0_10 = arith.constant 0 : index
    %c0_11 = arith.constant 0 : index
    %17 = vector.load %arg7[%c0_10, %c0_11] : memref<64x32xbf16, #tpu.memory_space<vmem>>, vector<64x32xbf16>
    %cst_12 = arith.constant dense<0.000000e+00> : vector<8x32xf32>
    %18 = tpu.matmul %16, %17, %cst_12 {dimension_numbers = #tpu.dot_dimension_numbers<[1], [0], [0], [1], [0, 0, 1, 1], [], []>} : vector<8x64xbf16>, vector<64x32xbf16>, vector<8x32xf32> -> vector<8x32xf32>
    %19 = arith.addf %15, %18 : vector<8x32xf32>
    %c0_13 = arith.constant 0 : index
    %c0_14 = arith.constant 0 : index
    %20 = vector.load %arg10[%c0_13, %c0_14] : memref<8x32xf32, #tpu.memory_space<vmem>>, vector<8x32xf32>
    tpu.vector_store %arg10[%c0_13, %c0_14], %19 {strides = array<i32>} : memref<8x32xf32, #tpu.memory_space<vmem>>, vector<8x32xf32>,
    %c0_i32_15 = arith.constant 0 : i32
    %21 = arith.cmpi eq, %arg2, %c0_i32_15 : i32
    %22 = arith.extui %21 : i1 to i32
    %c0_i32_16 = arith.constant 0 : i32
    %23 = arith.cmpi ne, %22, %c0_i32_16 : i32
    scf.if %23 {
      %c0_17 = arith.constant 0 : index
      %c0_18 = arith.constant 0 : index
      %c0_19 = arith.constant 0 : index
      %24 = vector.load %arg3[%c0_17, %c0_18, %c0_19] : memref<1x8x32xf32, #tpu.memory_space<vmem>>, vector<1x8x32xf32>
      %25 = vector.shape_cast %24 : vector<1x8x32xf32> to vector<8x32xf32>
      %c0_20 = arith.constant 0 : index
      %c0_21 = arith.constant 0 : index
      %26 = vector.load %arg10[%c0_20, %c0_21] : memref<8x32xf32, #tpu.memory_space<vmem>>, vector<8x32xf32>
      %27 = arith.addf %25, %26 : vector<8x32xf32>
      %c0_22 = arith.constant 0 : index
      %c0_23 = arith.constant 0 : index
      %c0_24 = arith.constant 0 : index
      %28 = vector.load %arg8[%c0_22, %c0_23, %c0_24] : memref<1x8x32xf32, #tpu.memory_space<vmem>>, vector<1x8x32xf32>
      %29 = vector.shape_cast %28 : vector<1x8x32xf32> to vector<8x32xf32>
      %30 = vector.shape_cast %27 : vector<8x32xf32> to vector<1x8x32xf32>
      tpu.vector_store %arg8[%c0_22, %c0_23, %c0_24], %30 {strides = array<i32>} : memref<1x8x32xf32, #tpu.memory_space<vmem>>, vector<1x8x32xf32>,
    } else {
    }
    return
  }
  func.func @transform_0(%arg0: i32, %arg1: i32, %arg2: i32) -> (i32, i32, i32) {
    %c0_i32 = arith.constant 0 : i32
    %c0_i32_0 = arith.constant 0 : i32
    return %arg0, %arg1, %c0_i32 : i32, i32, i32
  }
  func.func @transform_1(%arg0: i32, %arg1: i32, %arg2: i32) -> (i32, i32) {
    %c0_i32 = arith.constant 0 : i32
    %c0_i32_0 = arith.constant 0 : i32
    %c0_i32_1 = arith.constant 0 : i32
    return %c0_i32, %c0_i32_0 : i32, i32
  }
  func.func @transform_2(%arg0: i32, %arg1: i32, %arg2: i32) -> (i32, i32) {
    %c0_i32 = arith.constant 0 : i32
    %c0_i32_0 = arith.constant 0 : i32
    return %c0_i32, %arg2 : i32, i32
  }
  func.func @transform_3(%arg0: i32, %arg1: i32, %arg2: i32) -> (i32, i32) {
    %c0_i32 = arith.constant 0 : i32
    %c0_i32_0 = arith.constant 0 : i32
    return %c0_i32, %arg2 : i32, i32
  }
  func.func @transform_4(%arg0: i32, %arg1: i32, %arg2: i32) -> (i32, i32) {
    %c0_i32 = arith.constant 0 : i32
    %c0_i32_0 = arith.constant 0 : i32
    return %arg2, %c0_i32 : i32, i32
  }
  func.func @transform_5(%arg0: i32, %arg1: i32, %arg2: i32) -> (i32, i32, i32) {
    %c0_i32 = arith.constant 0 : i32
    %c0_i32_0 = arith.constant 0 : i32
    return %arg0, %arg1, %c0_i32 : i32, i32, i32
  }
}

</mosaic_0001>

<bundles_post_ra>
// kernel: checkpoint.26
= control target key start
LH: loop header
LB: loop body
LE: loop exit
PB: predicated region body
PF: predicated region fallthrough
CT: control target
= control target key end

     0   :  { %s552_s12 = smov 0   ;;  %s554_s13 = smov 0   ;;  %s594_s0 = inlined_call_operand.vmem [shape: bf16[2,8,32], index: 0, kind: input, shape index: {}]   ;;  %s595_s1 = inlined_call_operand.vmem [shape: bf16[32,32], index: 1, kind: input, shape index: {}]   ;;  %s596_s2 = inlined_call_operand.vmem [shape: f32[2,8,32], index: 2, kind: input, shape index: {}]   ;;  %s597_s3 = inlined_call_operand.vmem [shape: f32[2,8,32], index: 3, kind: output, shape index: {}]  }
   0x1   :  { %s556_s14 = smov 0  }
   0x2 LB: > { %s32_s15 = sadd.s32 1, %s524_s13  ;;  %p458_p0 = scmp.ge.s32.totalorder %s528_s14, 1  ;;  %s528_s14 = sphi %s556_s14, %s13_s14   ;;  %s524_s13 = sphi %s554_s13, %s599_s13   ;;  %s520_s12 = sphi %s552_s12, %s598_s12  }
   0x3   : > { %p34_p1 = scmp.ge.s32.totalorder %s32_s15, 2  ;;  %p192_p2 = scmp.lt.s32.totalorder %s528_s14, 3 }
   0x5   : > { %s601_s15 = smov (%p34_p1, %s32_s15), 0  ;;  %p193_p3 = pnand %p458_p0, %p192_p2 }
   0x6   : > { %p237_p4 = scmp.lt.s32.totalorder (!%p193_p3), %s520_s12, 1 }
   0x7   : > { %196 = sbr.rel (%p193_p3) target bundleno = 220 (0xdc), region = 32 }
   0xc   : > { %v504_v0 = vld [vmem:[%s595_s1 + $0x8] sm:$0xff]   ;;  %v530_v1 = vmov 0.0   ;;  %v505_v2 = vld [vmem:[%s595_s1] sm:$0xff]   ;;  %vm531_vm0 = vmmov 0   ;;  %s603_s12 = smov (!%p237_p4, %s520_s12), 1  ;;  %vm287_vm1 = vcmask 261120  }
   0xd   : > { %470 = vmatprep.subr.bf16.mxu0 %v530_v1  ;;  %474 = vmatprep.mubr.msk.bf16.mxu0 %vm531_vm0, %v530_v1  ;;  %s459_s20 = sshll.u32 %s603_s12, 2  ;;  %s460_s24 = sshll.u32 %s603_s12, 3 }
   0xe   : > { %471 = vmatpush3.bf16.msra.mxu0 %v504_v0  ;;  %s243_s23 = scalar_lea.vmem %s594_s0, %s459_s20  ;;  %s257_s27 = scalar_lea.vmem %s596_s2, %s460_s24 }
   0xf   : > { %472 = vmatprep.subr.bf16.mxu0 %v530_v1  ;;  %v269_v3 = vld [vmem:[%s243_s23] sm:$0xf]  ;;  %s267_s30 = scalar_lea.vmem %s597_s3, %s460_s24 }
  0x10   : > { %v274_v4 = vld [vmem:[%s257_s27] sm:$0xff] }
  0x12   : > { %473 = vmatpush3.bf16.msra.mxu0 %v505_v2 }
  0x15   : > { %475 = vmatmul.mubr.msk.bf16.vlgmr.msra.gmra.mxu0 %vm287_vm1, %v269_v3 }
  0xd5   : > { %v325_v5 = vpop.f32.mrf.mxu0 }
  0xd6   : > { %v326_v6 = vadd.f32 %v325_v5, %v274_v4 }
  0xd7   : > { %v476_v7 = vpop.f32.mrf.mxu0 }
  0xd8   : > { %331 = vst.msk [vmem:[%s267_s30] sm:$0xff] %vm287_vm1, %v326_v6 }
  0xd9   : > { %v328_v8 = vpop.f32.mrf.mxu0 }
  0xdb   : > { %v477_v9 = vpop.f32.mrf.mxu0 }
  0xdc PF: > { %s13_s14 = sadd.s32 1, %s528_s14   ;;  %s598_s12 = smov %s524_s13 }
  0xdd   : > { %p10_p5 = scmp.ge.s32.totalorder %s13_s14, 4   ;;  %s599_s13 = smov %s601_s15 }
  0xdf   :  { %12 = sbr.rel (!%p10_p5) target bundleno = 2 (0x2), region = 68 }

// kernel: checkpoint.24
= control target key start
LH: loop header
LB: loop body
LE: loop exit
PB: predicated region body
PF: predicated region fallthrough
CT: control target
= control target key end

     0   :  { %s524_s12 = smov 0   ;;  %s526_s13 = smov 0   ;;  %s572_s0 = inlined_call_operand.vmem [shape: f32[2,8,32], index: 0, kind: input, shape index: {}]   ;;  %s573_s1 = inlined_call_operand.vmem [shape: f32[1,32], index: 1, kind: input, shape index: {}]   ;;  %s574_s2 = inlined_call_operand.vmem [shape: bf16[32,96], index: 2, kind: input, shape index: {}]   ;;  %s575_s3 = inlined_call_operand.vmem [shape: bf16[2,8,96], index: 3, kind: output, shape index: {}]  }
   0x1   :  { %s528_s14 = smov 0  }
   0x2 LB: > { %s32_s15 = sadd.s32 1, %s496_s13  ;;  %p428_p0 = scmp.ge.s32.totalorder %s500_s14, 1  ;;  %s500_s14 = sphi %s528_s14, %s13_s14   ;;  %s496_s13 = sphi %s526_s13, %s577_s13   ;;  %s492_s12 = sphi %s524_s12, %s576_s12  }
   0x3   : > { %p34_p1 = scmp.ge.s32.totalorder %s32_s15, 2  ;;  %p173_p2 = scmp.lt.s32.totalorder %s500_s14, 3 }
   0x5   : > { %s579_s15 = smov (%p34_p1, %s32_s15), 0  ;;  %p174_p3 = pnand %p428_p0, %p173_p2 }
   0x6   : > { %p208_p4 = scmp.lt.s32.totalorder (!%p174_p3), %s492_s12, 1 }
   0x7   : > { %177 = sbr.rel (%p174_p3) target bundleno = 388 (0x184), region = 32 }
   0xc   : > { %s581_s12 = smov (!%p208_p4, %s492_s12), 1  ;;  %vm236_vm0 = vcmask 261120   ;;  %v474_v3 = vld [vmem:[%s574_s2 + $0x8] sm:$0xff]   ;;  %v502_v4 = vmov 0.0   ;;  %v475_v5 = vld [vmem:[%s574_s2] sm:$0xff]   ;;  %vm503_vm1 = vmmov 0  }
   0xd   : > { %s429_s16 = sshll.u32 %s581_s12, 3  ;;  %440 = vmatprep.subr.bf16.mxu0 %v502_v4  ;;  %444 = vmatprep.mubr.msk.bf16.mxu0 %vm503_vm1, %v502_v4  ;;  %v431_v10 = vld [vmem:[%s573_s1] ss:$0 sm:$0xff]  ;;  %vm254_vm2 = vcmask 257024   ;;  %s430_s26 = sshll.u32 %s581_s12, 2  ;;  %vm318_vm3 = vcmask 781312  }
   0xe   : > { %s214_s19 = scalar_lea.vmem %s572_s0, %s429_s16  ;;  %441 = vmatpush3.bf16.msra.mxu0 %v474_v3  ;;  %s228_s29 = scalar_lea.vmem %s575_s3, %s430_s26 }
   0xf   : > { %v234_v0 = vld [vmem:[%s214_s19] sm:$0xff]  ;;  %442 = vmatprep.subr.bf16.mxu0 %v502_v4 }
  0x10   : > { %v235_v1 = vmul.f32 %v234_v0, %v234_v0 }
  0x12   : > { %v237_v2 = vsel %vm236_vm0, %v235_v1, 0.0  ;;  %443 = vmatpush3.bf16.msra.mxu0 %v475_v5 }
  0x13   : > { %238 = vadd.xlane.f32.xlu0 %v237_v2 }
  0x9c   : > { %v239_v6 = vpop.xlane.xlu0 %238 }
  0x9d   : > { %v241_v7 = vmul.f32 0.03125, %v239_v6 }
  0x9f   : > { %v242_v8 = vadd.f32 1e-05, %v241_v7 }
  0xa1   : > { %476 = vrsqrt.f32 %v242_v8 }
  0xae   : > { %v477_v9 = vpop.eup %476 }
  0xaf   : > { %v244_v11 = vmul.f32 %v477_v9, %v234_v0 }
  0xb1   : > { %v252_v12 = vmul.f32 %v431_v10, %v244_v11 }
  0xb3   : > { %v253_v13 = vpack.c.bf16 %v252_v12, %v252_v12 }
  0xb5   : > { %255 = vst.msk [vmem:[#allocation2] sm:$0xf] %vm254_vm2, %v253_v13 }
  0xbc   : > { %v256_v14 = vld [vmem:[#allocation2] sm:$0xf] }
  0xbd   : > { %445 = vmatmul.mubr.msk.bf16.vlgmr.msra.gmra.mxu0 %vm236_vm0, %v256_v14 }
 0x17d   : > { %v311_v15 = vpop.f32.mrf.mxu0 }
 0x17e   : > { %v317_v16 = vpack.c.bf16 %v311_v15, %v311_v15 }
 0x17f   : > { %v446_v17 = vpop.f32.mrf.mxu0 }
 0x180   : > { %319 = vst.msk [vmem:[%s228_s29] sm:$0xf] %vm318_vm3, %v317_v16 }
 0x181   : > { %v314_v18 = vpop.f32.mrf.mxu0 }
 0x183   : > { %v447_v19 = vpop.f32.mrf.mxu0 }
 0x184 PF: > { %s13_s14 = sadd.s32 1, %s500_s14   ;;  %s576_s12 = smov %s496_s13 }
 0x185   : > { %p10_p5 = scmp.ge.s32.totalorder %s13_s14, 4   ;;  %s577_s13 = smov %s579_s15 }
 0x187   :  { %12 = sbr.rel (!%p10_p5) target bundleno = 2 (0x2), region = 69 }

// kernel: checkpoint.25
= control target key start
LH: loop header
LB: loop body
LE: loop exit
PB: predicated region body
PF: predicated region fallthrough
CT: control target
= control target key end

     0   :  { %s954_s12 = smov 0   ;;  %s956_s13 = smov 0   ;;  %s1028_s0 = inlined_call_operand.vmem [shape: bf16[2,4,8,8], index: 0, kind: input, shape index: {}]   ;;  %s1029_s1 = inlined_call_operand.vmem [shape: bf16[2,4,8,8], index: 1, kind: input, shape index: {}]   ;;  %s1030_s2 = inlined_call_operand.vmem [shape: bf16[2,4,8,8], index: 2, kind: input, shape index: {}]   ;;  %s1031_s3 = inlined_call_operand.vmem [shape: bf16[2,4,8,8], index: 3, kind: output, shape index: {}]  }
   0x1   :  { %s958_s14 = smov 0   ;;  %s960_s15 = smov 0  }
   0x2   :  { %s962_s16 = smov 0  }
   0x3 LB: > { %s35_s17 = sadd.s32 1, %s920_s14  ;;  %s39_s18 = sadd.s32 1, %s924_s15  ;;  %s928_s16 = sphi %s962_s16, %s13_s16   ;;  %s924_s15 = sphi %s960_s15, %s1035_s15   ;;  %s920_s14 = sphi %s958_s14, %s1034_s14   ;;  %s916_s13 = sphi %s956_s13, %s1033_s13   ;;  %s912_s12 = sphi %s954_s12, %s1032_s12  }
   0x4   : > { %p37_p0 = scmp.ge.s32.totalorder %s35_s17, 4  ;;  %p807_p1 = scmp.ge.s32.totalorder %s928_s16, 1 }
   0x5   : > { %p233_p2 = scmp.lt.s32.totalorder %s928_s16, 9 }
   0x6   : > { %s1037_s17 = smov (%p37_p0, %s35_s17), 0  ;;  %s1039_s18 = smov (!%p37_p0, %s39_s18), %s924_s15 }
   0x7   : > { %p234_p3 = pnand %p807_p1, %p233_p2  ;;  %p41_p4 = scmp.ge.s32.totalorder %s1039_s18, 2 }
   0x8   : > { %p295_p5 = scmp.lt.s32.totalorder (!%p234_p3), %s916_s13, 1  ;;  %p297_p6 = scmp.lt.s32.totalorder (!%p234_p3), %s912_s12, 3 }
   0x9   : > { %s1041_s18 = smov (%p41_p4, %s1039_s18), 0  ;;  %237 = sbr.rel (%p234_p3) target bundleno = 797 (0x31d), region = 32 }
   0xe   : > { %vm355_vm0 = vcmask 64512   ;;  %v930_v0 = vmov 0.0   ;;  %vm931_vm1 = vmmov 0   ;;  %s1043_s13 = smov (!%p295_p5, %s916_s13), 1  ;;  %s1045_s12 = smov (!%p297_p6, %s912_s12), 3  ;;  %vm352_vm2 = vcmask 7168  }
   0xf   : > { %826 = vmatprep.subr.bf16.mxu0 %v930_v0  ;;  %356 = vst.msk [vmem:[#allocation4] sm:$0xff] %vm355_vm0, %v930_v0  ;;  %828 = vmatprep.mubr.msk.bf16.mxu0 %vm931_vm1, %v930_v0  ;;  %s808_s19 = sshll.u32 %s1043_s13, 2  ;;  %v932_v4 = vmov -1e+30   ;;  %v547_v5 = vlaneseq  ;;  %v933_v14 = vmov 0   ;;  %vm594_vm4 = vcmask 1043456  }
  0x10   : > { %832 = vmatprep.subr.bf16.mxu1 %v930_v0  ;;  %834 = vmatprep.mubr.msk.bf16.mxu1 %vm931_vm1, %v930_v0  ;;  %s303_s20 = sadd.s32 %s808_s19, %s1045_s12  ;;  %353 = vst.msk [vmem:[#allocation2] sm:$0xff] %vm352_vm2, %v932_v4  ;;  %354 = vst.msk [vmem:[#allocation3] sm:$0xff] %vm352_vm2, %v930_v0  ;;  %vm654_vm5 = vcmask 60416  }
  0x11   : > { %s985_s21 = sshll.u32 %s303_s20, 2  ;;  %v548_v6 = vshrl.u32 %v547_v5, 7  ;;  %v553_v7 = vand.u32 127, %v547_v5  ;;  %882 = vset.pattern.permute.xlu0 %v933_v14  ;;  %883 = vset.pattern.permute.xlu1 %v933_v14 }
  0x12   : > { %s318_s24 = scalar_lea.vmem %s1029_s1, %s985_s21  ;;  %s305_s27 = scalar_lea.vmem %s1028_s0, %s985_s21 }
  0x13   : > { %v498_v1 = vld [vmem:[%s318_s24] sm:$0xf]  ;;  %vm556_vm3 = vcmp.le.s32.totalorder %v553_v7, %v548_v6  ;;  %s333_s30 = scalar_lea.vmem %s1030_s2, %s985_s21  ;;  %s346_s6 = scalar_lea.vmem %s1031_s3, %s985_s21 }
  0x14   : > { %v504_v2 = vsel %vm355_vm0, %v498_v1, 0  ;;  %v497_v3 = vld [vmem:[%s305_s27] sm:$0xf] }
  0x15   : > { %827 = vmatpush3.bf16.xpose.msra.mxu0 %v504_v2  ;;  %v590_v19 = vld [vmem:[%s333_s30] sm:$0xf] }
  0x16   : > { %v596_v20 = vsel %vm594_vm4, %v590_v19, 0  ;;  %v582_v35 = vld [vmem:[#allocation4] sm:$0xff] }
  0x17   : > { %v558_v15 = vld [vmem:[#allocation2] sm:$0xff]  ;;  %833 = vmatpush3.bf16.msra.mxu1 %v596_v20  ;;  %v574_v29 = vld [vmem:[#allocation3] sm:$0xff] }
  0x1c   : > { %829 = vmatmul.mubr.msk.bf16.vlgmr.msra.gmra.mxu0 %vm355_vm0, %v497_v3 }
  0xdc   : > { %v540_v8 = vpop.f32.mrf.mxu0 }
  0xdd   : > { %v557_v9 = vsel %vm556_vm3, %v540_v8, -1e+30 }
  0xde   : > { %v830_v10 = vpop.f32.mrf.mxu0  ;;  %v559_v11 = vsel %vm355_vm0, %v557_v9, -inf }
  0xdf   : > { %560 = vmax.xlane.f32.xlu0 %v559_v11 }
  0xe0   : > { %v543_v12 = vpop.f32.mrf.mxu0 }
  0xe2   : > { %v831_v13 = vpop.f32.mrf.mxu0 }
 0x168   : > { %v561_v16 = vpop.xlane.xlu0 %560 }
 0x169   : > { %v562_v17 = vmax.f32 %v558_v15, %v561_v16 }
 0x16b   : > { %v563_v18 = vsub.f32 %v558_v15, %v562_v17  ;;  %640 = vst.msk [vmem:[#allocation2] sm:$0xff] %vm352_vm2, %v562_v17  ;;  %568 = vperm.xlu0 %882, %v562_v17  }
 0x16d   : > { %v564_v25 = vmul.f32 1.442695, %v563_v18 }
 0x1e6   : > { %v569_v21 = vpop.permute.xlu0 %568 }
 0x1e7   : > { %v571_v22 = vsub.f32 %v557_v9, %v569_v21 }
 0x1e9   : > { %v572_v23 = vmul.f32 1.442695, %v571_v22 }
 0x1eb   : > { %884 = vpow2.f32 %v572_v23 }
 0x1ec   : > { %886 = vpow2.f32 %v564_v25 }
 0x1f8   : > { %v885_v24 = vpop.eup %884 }
 0x1f9   : > { %v576_v26 = vsel %vm355_vm0, %v885_v24, 0.0  ;;  %v589_v27 = vpack.c.bf16 %v885_v24, %v885_v24  ;;  %v887_v28 = vpop.eup %886 }
 0x1fa   : > { %577 = vadd.xlane.f32.xlu1 %v576_v26  ;;  %v575_v30 = vmul.f32 %v887_v28, %v574_v29 }
 0x1fb   : > { %835 = vmatmul.mubr.msk.bf16.vlgmr.msra.gmra.mxu1 %vm355_vm0, %v589_v27 }
 0x20b   : > { %585 = vperm.xlu1 %883, %v887_v28  }
 0x283   : > { %v578_v31 = vpop.xlane.xlu1 %577 }
 0x284   : > { %v579_v32 = vadd.f32 %v578_v31, %v575_v30 }
 0x286   : > { %581 = vst.msk [vmem:[#allocation3] sm:$0xff] %vm352_vm2, %v579_v32 }
 0x287   : > { %v586_v36 = vpop.permute.xlu1 %585 }
 0x288   : > { %v588_v37 = vmul.f32 %v586_v36, %v582_v35 }
 0x28d   : > { %v644_v33 = vld [vmem:[#allocation3] sm:$0xff] }
 0x28e   : > { %888 = vrcp.f32 %v644_v33 }
 0x29b   : > { %v889_v34 = vpop.eup %888 }
 0x29c   : > { %649 = vperm.xlu1 %883, %v889_v34  }
 0x2bb   : > { %v632_v38 = vpop.f32.mrf.mxu1 }
 0x2bc   : > { %v638_v39 = vadd.f32 %v632_v38, %v588_v37 }
 0x2bd   : > { %v836_v40 = vpop.f32.mrf.mxu1 }
 0x2be   : > { %639 = vst.msk [vmem:[#allocation4] sm:$0xff] %vm355_vm0, %v638_v39 }
 0x2bf   : > { %v635_v41 = vpop.f32.mrf.mxu1 }
 0x2c1   : > { %v837_v42 = vpop.f32.mrf.mxu1 }
 0x2c5   : > { %v646_v43 = vld [vmem:[#allocation4] sm:$0xff] }
 0x317   : > { %v650_v44 = vpop.permute.xlu1 %649 }
 0x318   : > { %v652_v45 = vmul.f32 %v650_v44, %v646_v43 }
 0x31a   : > { %v653_v46 = vpack.c.bf16 %v652_v45, %v652_v45 }
 0x31c   : > { %655 = vst.msk [vmem:[%s346_s6] sm:$0xf] %vm654_vm5, %v653_v46 }
 0x31d PF: > { %s13_s16 = sadd.s32 1, %s928_s16   ;;  %s1032_s12 = smov %s920_s14 }
 0x31e   : > { %p10_p7 = scmp.ge.s32.totalorder %s13_s16, 10   ;;  %s1033_s13 = smov %s924_s15 }
 0x31f   : > { %s1034_s14 = smov %s1037_s17  ;;  %s1035_s15 = smov %s1041_s18 }
 0x320   :  { %12 = sbr.rel (!%p10_p7) target bundleno = 3 (0x3), region = 84 }

// kernel: checkpoint.27
= control target key start
LH: loop header
LB: loop body
LE: loop exit
PB: predicated region body
PF: predicated region fallthrough
CT: control target
= control target key end

     0   :  { %s837_s18 = smov 0   ;;  %s839_s19 = smov 0   ;;  %s919_s0 = inlined_call_operand.vmem [shape: f32[2,8,32], index: 0, kind: input, shape index: {}]   ;;  %s920_s1 = inlined_call_operand.vmem [shape: f32[1,32], index: 1, kind: input, shape index: {}]   ;;  %s921_s2 = inlined_call_operand.vmem [shape: bf16[32,64], index: 2, kind: input, shape index: {}]   ;;  %s922_s3 = inlined_call_operand.vmem [shape: bf16[32,64], index: 3, kind: input, shape index: {}]   ;;  %s923_s4 = inlined_call_operand.vmem [shape: bf16[64,32], index: 4, kind: input, shape index: {}]   ;;  %s924_s5 = inlined_call_operand.vmem [shape: f32[2,8,32], index: 5, kind: output, shape index: {}]  }
   0x1   :  { %s841_s20 = smov 0  }
   0x2 LB: > { %s34_s21 = sadd.s32 1, %s799_s19  ;;  %p684_p0 = scmp.ge.s32.totalorder %s803_s20, 1  ;;  %s803_s20 = sphi %s841_s20, %s15_s20   ;;  %s799_s19 = sphi %s839_s19, %s926_s19   ;;  %s795_s18 = sphi %s837_s18, %s925_s18  }
   0x3   : > { %p36_p1 = scmp.ge.s32.totalorder %s34_s21, 2  ;;  %p241_p2 = scmp.lt.s32.totalorder %s803_s20, 3 }
   0x5   : > { %s928_s21 = smov (%p36_p1, %s34_s21), 0  ;;  %p242_p3 = pnand %p684_p0, %p241_p2 }
   0x6   : > { %p286_p4 = scmp.lt.s32.totalorder (!%p242_p3), %s795_s18, 1 }
   0x7   : > { %245 = sbr.rel (%p242_p3) target bundleno = 626 (0x272), region = 40 }
   0xc   : > { %s930_s18 = smov (!%p286_p4, %s795_s18), 1  ;;  %vm321_vm0 = vcmask 261120   ;;  %v767_v3 = vld [vmem:[%s921_s2 + $0x8] sm:$0xff]   ;;  %v805_v4 = vmov 0.0   ;;  %v768_v5 = vld [vmem:[%s921_s2] sm:$0xff]   ;;  %vm806_vm1 = vmmov 0  }
   0xd   : > { %s685_s22 = sshll.u32 %s930_s18, 3  ;;  %713 = vmatprep.subr.bf16.mxu1 %v805_v4  ;;  %341 = vst.msk [vmem:[#allocation3] sm:$0xff] %vm321_vm0, %v805_v4  ;;  %729 = vmatprep.subr.bf16.mxu0 %v805_v4  ;;  %v687_v10 = vld [vmem:[%s920_s1] ss:$0 sm:$0xff]  ;;  %vm339_vm2 = vcmask 257024   ;;  %v769_v14 = vld [vmem:[%s922_s3 + $0x8] sm:$0xff]  }
   0xe   : > { %s292_s25 = scalar_lea.vmem %s919_s0, %s685_s22  ;;  %714 = vmatpush3.bf16.msra.mxu1 %v767_v3  ;;  %717 = vmatprep.mubr.msk.bf16.mxu1 %vm806_vm1, %v805_v4  ;;  %v770_v16 = vld [vmem:[%s922_s3] sm:$0xff]   ;;  %v771_v17 = vld [vmem:[%s923_s4 + $0x18] sm:$0xff]   ;;  %v772_v18 = vld [vmem:[%s923_s4 + $0x10] sm:$0xff]   ;;  %vm501_vm3 = vcmask 523264   ;;  %s313_s26 = scalar_lea.vmem %s924_s5, %s685_s22 }
   0xf   : > { %v863_v0 = vld [vmem:[%s292_s25] sm:$0xff]  ;;  %715 = vmatprep.subr.bf16.mxu1 %v805_v4  ;;  %737 = vmatprep.mubr.msk.bf16.mxu0 %vm806_vm1, %v805_v4  ;;  %v773_v19 = vld [vmem:[%s923_s4 + $0x8] sm:$0xff]  }
  0x10   : > { %v320_v1 = vmul.f32 %v863_v0, %v863_v0  ;;  %730 = vmatpush3.bf16.msra.mxu0 %v771_v17  ;;  %v774_v20 = vld [vmem:[%s923_s4] sm:$0xff]  }
  0x11   : > { %731 = vmatprep.subr.bf16.mxu0 %v805_v4 }
  0x12   : > { %v322_v2 = vsel %vm321_vm0, %v320_v1, 0.0  ;;  %716 = vmatpush3.bf16.msra.mxu1 %v768_v5 }
  0x13   : > { %323 = vadd.xlane.f32.xlu0 %v322_v2  ;;  %721 = vmatprep.subr.bf16.mxu1 %v805_v4 }
  0x14   : > { %732 = vmatpush3.bf16.msra.mxu0 %v772_v18  ;;  %v467_v36 = vld [vmem:[#allocation3] sm:$0xff] }
  0x15   : > { %733 = vmatprep.subr.bf16.mxu0 %v805_v4 }
  0x18   : > { %734 = vmatpush3.bf16.msra.mxu0 %v773_v19 }
  0x19   : > { %735 = vmatprep.subr.bf16.mxu0 %v805_v4 }
  0x1c   : > { %736 = vmatpush3.bf16.msra.mxu0 %v774_v20 }
  0x9c   : > { %v324_v6 = vpop.xlane.xlu0 %323 }
  0x9d   : > { %v326_v7 = vmul.f32 0.03125, %v324_v6 }
  0x9f   : > { %v327_v8 = vadd.f32 1e-05, %v326_v7 }
  0xa1   : > { %775 = vrsqrt.f32 %v327_v8 }
  0xae   : > { %v776_v9 = vpop.eup %775 }
  0xaf   : > { %v329_v11 = vmul.f32 %v776_v9, %v863_v0 }
  0xb1   : > { %v337_v12 = vmul.f32 %v687_v10, %v329_v11 }
  0xb3   : > { %v338_v13 = vpack.c.bf16 %v337_v12, %v337_v12 }
  0xb5   : > { %340 = vst.msk [vmem:[#allocation2] sm:$0xf] %vm339_vm2, %v338_v13 }
  0xbc   : > { %v342_v15 = vld [vmem:[#allocation2] sm:$0xf] }
  0xbd   : > { %718 = vmatmul.mubr.msk.bf16.vlgmr.msra.gmra.mxu1 %vm321_vm0, %v342_v15 }
  0xbe   : > { %722 = vmatpush3.bf16.msra.mxu1 %v769_v14  ;;  %725 = vmatprep.mubr.msk.bf16.mxu1 %vm806_vm1, %v805_v4 }
  0xbf   : > { %723 = vmatprep.subr.bf16.mxu1 %v805_v4 }
  0xc2   : > { %724 = vmatpush3.bf16.msra.mxu1 %v770_v16 }
  0xc5   : > { %726 = vmatmul.mubr.msk.bf16.vlgmr.msra.gmra.mxu1 %vm321_vm0, %v342_v15 }
 0x17d   : > { %v397_v21 = vpop.f32.mrf.mxu1 }
 0x17e   : > { %v694_v22 = vmul.f32 -1.442695, %v397_v21 }
 0x17f   : > { %v719_v23 = vpop.f32.mrf.mxu1 }
 0x180   : > { %777 = vpow2.f32 %v694_v22 }
 0x181   : > { %v400_v24 = vpop.f32.mrf.mxu1 }
 0x183   : > { %v720_v25 = vpop.f32.mrf.mxu1 }
 0x185   : > { %v453_v26 = vpop.f32.mrf.mxu1 }
 0x187   : > { %v727_v27 = vpop.f32.mrf.mxu1 }
 0x189   : > { %v456_v28 = vpop.f32.mrf.mxu1 }
 0x18b   : > { %v728_v29 = vpop.f32.mrf.mxu1 }
 0x18d   : > { %v778_v30 = vpop.eup %777 }
 0x18e   : > { %v462_v31 = vadd.f32 1.0, %v778_v30 }
 0x190   : > { %779 = vrcp.f32 %v462_v31 }
 0x19d   : > { %v780_v32 = vpop.eup %779 }
 0x19e   : > { %v465_v33 = vmul.f32 %v780_v32, %v397_v21 }
 0x1a0   : > { %v466_v34 = vmul.f32 %v465_v33, %v453_v26 }
 0x1a2   : > { %v468_v35 = vpack.c.bf16 %v466_v34, %v466_v34 }
 0x1a4   : > { %738 = vmatmul.mubr.msk.bf16.vlgmr.msra.gmra.mxu0 %vm501_vm3, %v468_v35 }
 0x264   : > { %v539_v37 = vpop.f32.mrf.mxu0 }
 0x265   : > { %v545_v38 = vadd.f32 %v539_v37, %v467_v36 }
 0x266   : > { %v739_v39 = vpop.f32.mrf.mxu0 }
 0x267   : > { %546 = vst.msk [vmem:[#allocation3] sm:$0xff] %vm321_vm0, %v545_v38 }
 0x268   : > { %v542_v40 = vpop.f32.mrf.mxu0 }
 0x26a   : > { %v740_v41 = vpop.f32.mrf.mxu0 }
 0x26e   : > { %v551_v42 = vld [vmem:[#allocation3] sm:$0xff] }
 0x26f   : > { %v552_v43 = vadd.f32 %v551_v42, %v863_v0 }
 0x271   : > { %553 = vst.msk [vmem:[%s313_s26] sm:$0xff] %vm321_vm0, %v552_v43 }
 0x272 PF: > { %s15_s20 = sadd.s32 1, %s803_s20   ;;  %s925_s18 = smov %s799_s19 }
 0x273   : > { %p12_p5 = scmp.ge.s32.totalorder %s15_s20, 4   ;;  %s926_s19 = smov %s928_s21 }
 0x275   :  { %14 = sbr.rel (!%p12_p5) target bundleno = 2 (0x2), region = 87 }

</bundles_post_ra>
